<compile_context>
chip_gen: v5e
topology: v5e:2x2
jax: 0.10.0
libtpu: 0.0.40
codegen_flags: <defaults>
</compile_context>

<pallas_src>
import functools

import jax
import jax.numpy as jnp
from jax.experimental import pallas as pl
from jax.experimental.pallas import tpu as pltpu

LN10 = 2.302585092994046


def _sigmoid(x):
    return 1.0 / (1.0 + jnp.exp(-x))


def _softplus(x):
    # numerically-stable softplus using only exp/log/abs/max (all lower on TPU)
    return jnp.maximum(x, 0.0) + jnp.log(1.0 + jnp.exp(-jnp.abs(x)))


# --------------------------------------------------------------------------------
# Kernel 1: the three tiny MLP heads + log10(t), packed into one (TB, 4) output.
# --------------------------------------------------------------------------------
def heads_kernel(t_ref, v_ref, w1_ref, b1_ref, w2_ref, b2_ref, w3t_ref, b3_ref,
                 out_ref):
    v = v_ref[...]                                   # (TB, 1)
    logt = jnp.log(t_ref[...]) * (1.0 / LN10)        # log10(t), (TB, 1)

    def ffnn(k):
        # Linear(1, H) + Sigmoid: in_features == 1 -> pure broadcast on the VPU
        h1 = _sigmoid(v * w1_ref[k] + b1_ref[k])                      # (TB, H)
        # Linear(H, H) + Sigmoid: one padded MXU matmul (replaces broadcast loop)
        z = jnp.dot(h1, w2_ref[k], preferred_element_type=jnp.float32) + b2_ref[k]
        h2 = _sigmoid(z)                                              # (TB, H)
        # Linear(H, 1): lane reduction against the pre-transposed (1, H) weight
        return jnp.sum(h2 * w3t_ref[k], axis=-1, keepdims=True) + b3_ref[k]

    A = _sigmoid(ffnn(0))          # A_net     = FFNN + Sigmoid
    w = _softplus(ffnn(1))         # w_net     = FFNN + Softplus
    logt1 = ffnn(2)                # logt1_net = FFNN

    out_ref[:, 0:1] = logt
    out_ref[:, 1:2] = A
    out_ref[:, 2:3] = w
    out_ref[:, 3:4] = logt1


# --------------------------------------------------------------------------------
# Kernel 2: (TB, S) probability density + uniform-grid trapezoid integration.
# --------------------------------------------------------------------------------
def density_kernel(awl_ref, logt0_ref, out_ref, *, n, dx, samples):
    awl = awl_ref[...]                               # (TB, 4): [logt, A, w, logt1]
    logt = awl[:, 0:1]
    A = awl[:, 1:2]
    w = awl[:, 2:3]
    logt1 = awl[:, 3:4]
    logt0 = logt0_ref[...]                           # (1, S)

    # F = A/pi * w / ((logt0 - logt1)^2 + w^2)
    diff = logt0 - logt1                             # (TB, S)
    F = (A * (1.0 / jnp.pi)) * (w / (diff * diff + w * w))
    # (10**logt / 10**logt0)**n == exp(ln(10) * n * (logt - logt0)); exponent in f32
    expo = (LN10 * n) * (logt - logt0)               # (TB, S)
    pd = (1.0 - jnp.exp(-jnp.exp(expo))) * F         # (TB, S)

    # Uniform-grid trapezoid: dx * (sum - 0.5*(first + last)).  Keeps one clean
    # full-lane reduction, no (TB, S-1) misaligned slices.
    total = jnp.sum(pd, axis=-1, keepdims=True)                       # (TB, 1)
    edges = 0.5 * (pd[:, 0:1] + pd[:, samples - 1:samples])           # (TB, 1)
    out_ref[...] = dx * (total - edges)


# --------------------------------------------------------------------------------
# Wrappers
# --------------------------------------------------------------------------------
def _row_spec(tb, cols):
    return pl.BlockSpec((tb, cols), lambda i: (i, 0))


def _full_spec(shape):
    zeros = (0,) * len(shape)
    return pl.BlockSpec(shape, lambda i, _z=zeros: _z)


def _heads_call(t, v, params, *, tb):
    Bp = t.shape[0]
    return pl.pallas_call(
        heads_kernel,
        out_shape=jax.ShapeDtypeStruct((Bp, 4), jnp.float32),
        grid=(Bp // tb,),
        in_specs=[_row_spec(tb, 1), _row_spec(tb, 1)]
                 + [_full_spec(p.shape) for p in params],
        out_specs=_row_spec(tb, 4),
        compiler_params=pltpu.CompilerParams(dimension_semantics=("parallel",)),
    )(t, v, *params)


def _density_call(awl, logt0, *, n, dx, tb):
    Bp = awl.shape[0]
    S = logt0.shape[-1]
    return pl.pallas_call(
        functools.partial(density_kernel, n=float(n), dx=float(dx), samples=int(S)),
        out_shape=jax.ShapeDtypeStruct((Bp, 1), jnp.float32),
        grid=(Bp // tb,),
        in_specs=[_row_spec(tb, 4),
                  pl.BlockSpec((1, S), lambda i: (0, 0))],
        out_specs=_row_spec(tb, 1),
        compiler_params=pltpu.CompilerParams(dimension_semantics=("parallel",)),
    )(awl, logt0)


def nls_model_forward(t, v, params, *, n, itg_window, itg_samples, tb=8):
    """Full NLSModel forward.

    params = (W1s, b1s, W2s, b2s, W3s_T, b3s), each stacked over the 3 heads
    (order: A_net, w_net, logt1_net).  For large B pick tb ~ 256-512 (about half
    on v7x) to amortize per-step overhead; tb must be a multiple of 8.
    """
    B = t.shape[0]
    Bp = int(pl.cdiv(B, tb)) * tb
    t = t.astype(jnp.float32)
    v = v.astype(jnp.float32)
    if Bp != B:
        pad = Bp - B
        t = jnp.concatenate([t, jnp.ones((pad, 1), jnp.float32)], axis=0)
        v = jnp.concatenate([v, jnp.zeros((pad, 1), jnp.float32)], axis=0)

    # Kernel 1: [log10(t), A, w, logt1] packed per row.
    awl = _heads_call(t, v, params, tb=tb)                      # (Bp, 4)

    # Whole-batch mean(logt1) -> integration bounds (torch's `.item()` step).
    # Done in plain JAX so the density kernel can be batch-tiled independently.
    mean_logt1 = jnp.mean(awl[:B, 3])
    lower = mean_logt1 - itg_window
    upper = mean_logt1 + itg_window
    logt0 = jnp.linspace(lower, upper, itg_samples,
                         dtype=jnp.float32).reshape(1, itg_samples)
    dx = 2.0 * float(itg_window) / (int(itg_samples) - 1)

    # Kernel 2: density + trapezoid integration.
    out = _density_call(awl, logt0, n=n, dx=dx, tb=tb)          # (Bp, 1)
    return out[:B, 0]                                           # (B,)


# ---------------- deterministic parameter init (PyTorch-default-like) ----------------
def _init_ffnn(key, hidden=10):
    ks = jax.random.split(key, 6)

    def u(k, shape, fan_in):
        b = 1.0 / jnp.sqrt(fan_in)
        return jax.random.uniform(k, shape, jnp.float32, -b, b)

    W1 = u(ks[0], (1, hidden), 1.0)
    b1 = u(ks[1], (1, hidden), 1.0)
    W2 = u(ks[2], (hidden, hidden), float(hidden))
    b2 = u(ks[3], (1, hidden), float(hidden))
    W3 = u(ks[4], (hidden, 1), float(hidden))
    b3 = u(ks[5], (1, 1), float(hidden))
    return W1, b1, W2, b2, W3, b3


def _stack_params(per_net):
    """per_net: list of 3 tuples (W1,b1,W2,b2,W3,b3) -> kernel-layout stacked params."""
    W1s = jnp.stack([p[0] for p in per_net])                 # (3, 1, H)
    b1s = jnp.stack([p[1] for p in per_net])                 # (3, 1, H)
    W2s = jnp.stack([p[2] for p in per_net])                 # (3, H, H)
    b2s = jnp.stack([p[3] for p in per_net])                 # (3, 1, H)
    W3sT = jnp.stack([p[4].T for p in per_net])              # (3, 1, H)  pre-transposed
    b3s = jnp.stack([p[5] for p in per_net])                 # (3, 1, 1)
    return (W1s, b1s, W2s, b2s, W3sT, b3s)


# ---------------- pure-JAX reference (mirrors the PyTorch forward) ----------------
def _ref_forward(t, v, per_net, *, n, itg_window, itg_samples):
    def ffnn(x, p):
        W1, b1, W2, b2, W3, b3 = p
        h = jax.nn.sigmoid(x @ W1 + b1)
        h = jax.nn.sigmoid(h @ W2 + b2)
        return h @ W3 + b3

    A = jax.nn.sigmoid(ffnn(v, per_net[0]))
    w = jax.nn.softplus(ffnn(v, per_net[1]))
    logt1 = ffnn(v, per_net[2])
    logt = jnp.log10(t)
    m = jnp.mean(logt1)
    logt0 = jnp.linspace(m - itg_window, m + itg_window, itg_samples)   # (S,)
    F = A / jnp.pi * (w / ((logt0 - logt1) ** 2 + w ** 2))
    pd = (1.0 - jnp.exp(-((10.0 ** logt) / (10.0 ** logt0)) ** n)) * F  # (B, S)
    dl = logt0[1:] - logt0[:-1]
    return jnp.sum(0.5 * (pd[:, 1:] + pd[:, :-1]) * dl, axis=-1)        # (B,)


if __name__ == "__main__":
    B, H = 32, 10
    N_EXP = 0.5          # self.n
    ITG_WINDOW = 2.0     # self.itg_window
    ITG_SAMPLES = 128    # self.itg_samples
    TB = 8               # batch tile (multiple of 8); grid = B/TB = 4

    key = jax.random.PRNGKey(0)
    k_t, k_v, k_a, k_w, k_l = jax.random.split(key, 5)

    t = 10.0 ** jax.random.uniform(k_t, (B, 1), jnp.float32, -2.0, 4.0)   # times > 0
    v = jax.random.uniform(k_v, (B, 1), jnp.float32, -1.0, 1.0)

    per_net = [_init_ffnn(k_a, H), _init_ffnn(k_w, H), _init_ffnn(k_l, H)]  # A, w, logt1
    params = _stack_params(per_net)

    out = nls_model_forward(t, v, params, n=N_EXP, itg_window=ITG_WINDOW,
                            itg_samples=ITG_SAMPLES, tb=TB)
    out = jax.block_until_ready(out)

    ref = _ref_forward(t, v, per_net, n=N_EXP, itg_window=ITG_WINDOW,
                       itg_samples=ITG_SAMPLES)
    assert out.shape == (B,)
    assert jnp.allclose(out, ref, rtol=1e-4, atol=1e-5), (out, ref)

    print("KERNEL_OK")
</pallas_src>

<mosaic_0001>
module attributes {stable_mosaic.version = 11 : i64} {
  func.func @heads_kernel(%arg0: i32, %arg1: memref<8x1xf32, #tpu.memory_space<vmem>>, %arg2: memref<8x1xf32, #tpu.memory_space<vmem>>, %arg3: memref<3x1x10xf32, #tpu.memory_space<vmem>>, %arg4: memref<3x1x10xf32, #tpu.memory_space<vmem>>, %arg5: memref<3x10x10xf32, #tpu.memory_space<vmem>>, %arg6: memref<3x1x10xf32, #tpu.memory_space<vmem>>, %arg7: memref<3x1x10xf32, #tpu.memory_space<vmem>>, %arg8: memref<3x1x1xf32, #tpu.memory_space<vmem>>, %arg9: memref<8x4xf32, #tpu.memory_space<vmem>>) attributes {dimension_semantics = [#tpu.dimension_semantics<parallel>], iteration_bounds = array<i64: 4>, scalar_prefetch = 0 : i64, scratch_operands = 0 : i64, tpu.core_type = #tpu.core_type<tc>, window_params = [{transform_indices = @transform_0, window_bounds = array<i64: 8, 1>}, {transform_indices = @transform_1, window_bounds = array<i64: 8, 1>}, {pipeline_mode = #tpu.pipeline_mode<synchronous>, transform_indices = @transform_2, window_bounds = array<i64: 3, 1, 10>}, {pipeline_mode = #tpu.pipeline_mode<synchronous>, transform_indices = @transform_3, window_bounds = array<i64: 3, 1, 10>}, {pipeline_mode = #tpu.pipeline_mode<synchronous>, transform_indices = @transform_4, window_bounds = array<i64: 3, 10, 10>}, {pipeline_mode = #tpu.pipeline_mode<synchronous>, transform_indices = @transform_5, window_bounds = array<i64: 3, 1, 10>}, {pipeline_mode = #tpu.pipeline_mode<synchronous>, transform_indices = @transform_6, window_bounds = array<i64: 3, 1, 10>}, {pipeline_mode = #tpu.pipeline_mode<synchronous>, transform_indices = @transform_7, window_bounds = array<i64: 3, 1, 1>}, {transform_indices = @transform_8, window_bounds = array<i64: 8, 4>}]} {
    %c0 = arith.constant 0 : index
    %c0_0 = arith.constant 0 : index
    %0 = vector.load %arg2[%c0, %c0_0] : memref<8x1xf32, #tpu.memory_space<vmem>>, vector<8x1xf32>
    %c0_1 = arith.constant 0 : index
    %c0_2 = arith.constant 0 : index
    %1 = vector.load %arg1[%c0_1, %c0_2] : memref<8x1xf32, #tpu.memory_space<vmem>>, vector<8x1xf32>
    %2 = math.log %1 : vector<8x1xf32>
    %cst = arith.constant 0.434294492 : f32
    %3 = vector.broadcast %cst : f32 to vector<8x1xf32>
    %4 = arith.mulf %2, %3 : vector<8x1xf32>
    %c0_3 = arith.constant 0 : index
    %c0_4 = arith.constant 0 : index
    %c0_5 = arith.constant 0 : index
    %5 = vector.load %arg3[%c0_3, %c0_4, %c0_5] : memref<3x1x10xf32, #tpu.memory_space<vmem>>, vector<1x1x10xf32>
    %6 = vector.shape_cast %5 : vector<1x1x10xf32> to vector<1x10xf32>
    %7 = vector.broadcast %0 : vector<8x1xf32> to vector<8x10xf32>
    %8 = vector.broadcast %6 : vector<1x10xf32> to vector<8x10xf32>
    %9 = arith.mulf %7, %8 : vector<8x10xf32>
    %c0_6 = arith.constant 0 : index
    %c0_7 = arith.constant 0 : index
    %c0_8 = arith.constant 0 : index
    %10 = vector.load %arg4[%c0_6, %c0_7, %c0_8] : memref<3x1x10xf32, #tpu.memory_space<vmem>>, vector<1x1x10xf32>
    %11 = vector.shape_cast %10 : vector<1x1x10xf32> to vector<1x10xf32>
    %12 = vector.broadcast %11 : vector<1x10xf32> to vector<8x10xf32>
    %13 = arith.addf %9, %12 : vector<8x10xf32>
    %cst_9 = arith.constant 0.000000e+00 : f32
    %14 = vector.broadcast %cst_9 : f32 to vector<8x10xf32>
    %15 = arith.subf %14, %13 : vector<8x10xf32>
    %16 = math.exp %15 : vector<8x10xf32>
    %cst_10 = arith.constant 1.000000e+00 : f32
    %17 = vector.broadcast %cst_10 : f32 to vector<8x10xf32>
    %18 = arith.addf %17, %16 : vector<8x10xf32>
    %cst_11 = arith.constant 1.000000e+00 : f32
    %19 = vector.broadcast %cst_11 : f32 to vector<8x10xf32>
    %20 = arith.divf %19, %18 : vector<8x10xf32>
    %c0_12 = arith.constant 0 : index
    %c0_13 = arith.constant 0 : index
    %c0_14 = arith.constant 0 : index
    %21 = vector.load %arg5[%c0_12, %c0_13, %c0_14] : memref<3x10x10xf32, #tpu.memory_space<vmem>>, vector<1x10x10xf32>
    %22 = vector.shape_cast %21 : vector<1x10x10xf32> to vector<10x10xf32>
    %cst_15 = arith.constant dense<0.000000e+00> : vector<8x10xf32>
    %23 = tpu.matmul %20, %22, %cst_15 {dimension_numbers = #tpu.dot_dimension_numbers<[1], [0], [0], [1], [0, 0, 1, 1], [], []>} : vector<8x10xf32>, vector<10x10xf32>, vector<8x10xf32> -> vector<8x10xf32>
    %c0_16 = arith.constant 0 : index
    %c0_17 = arith.constant 0 : index
    %c0_18 = arith.constant 0 : index
    %24 = vector.load %arg6[%c0_16, %c0_17, %c0_18] : memref<3x1x10xf32, #tpu.memory_space<vmem>>, vector<1x1x10xf32>
    %25 = vector.shape_cast %24 : vector<1x1x10xf32> to vector<1x10xf32>
    %26 = vector.broadcast %25 : vector<1x10xf32> to vector<8x10xf32>
    %27 = arith.addf %23, %26 : vector<8x10xf32>
    %cst_19 = arith.constant 0.000000e+00 : f32
    %28 = vector.broadcast %cst_19 : f32 to vector<8x10xf32>
    %29 = arith.subf %28, %27 : vector<8x10xf32>
    %30 = math.exp %29 : vector<8x10xf32>
    %cst_20 = arith.constant 1.000000e+00 : f32
    %31 = vector.broadcast %cst_20 : f32 to vector<8x10xf32>
    %32 = arith.addf %31, %30 : vector<8x10xf32>
    %cst_21 = arith.constant 1.000000e+00 : f32
    %33 = vector.broadcast %cst_21 : f32 to vector<8x10xf32>
    %34 = arith.divf %33, %32 : vector<8x10xf32>
    %c0_22 = arith.constant 0 : index
    %c0_23 = arith.constant 0 : index
    %c0_24 = arith.constant 0 : index
    %35 = vector.load %arg7[%c0_22, %c0_23, %c0_24] : memref<3x1x10xf32, #tpu.memory_space<vmem>>, vector<1x1x10xf32>
    %36 = vector.shape_cast %35 : vector<1x1x10xf32> to vector<1x10xf32>
    %37 = vector.broadcast %36 : vector<1x10xf32> to vector<8x10xf32>
    %38 = arith.mulf %34, %37 : vector<8x10xf32>
    %cst_25 = arith.constant dense<0.000000e+00> : vector<8xf32>
    %39 = vector.multi_reduction <add>, %38, %cst_25 [1] : vector<8x10xf32> to vector<8xf32>
    %40 = vector.shape_cast %39 : vector<8xf32> to vector<8x1xf32>
    %c0_26 = arith.constant 0 : index
    %c0_27 = arith.constant 0 : index
    %c0_28 = arith.constant 0 : index
    %41 = vector.load %arg8[%c0_26, %c0_27, %c0_28] : memref<3x1x1xf32, #tpu.memory_space<vmem>>, vector<1x1x1xf32>
    %42 = vector.shape_cast %41 : vector<1x1x1xf32> to vector<1x1xf32>
    %43 = vector.broadcast %42 : vector<1x1xf32> to vector<8x1xf32>
    %44 = arith.addf %40, %43 : vector<8x1xf32>
    %cst_29 = arith.constant 0.000000e+00 : f32
    %45 = vector.broadcast %cst_29 : f32 to vector<8x1xf32>
    %46 = arith.subf %45, %44 : vector<8x1xf32>
    %47 = math.exp %46 : vector<8x1xf32>
    %cst_30 = arith.constant 1.000000e+00 : f32
    %48 = vector.broadcast %cst_30 : f32 to vector<8x1xf32>
    %49 = arith.addf %48, %47 : vector<8x1xf32>
    %cst_31 = arith.constant 1.000000e+00 : f32
    %50 = vector.broadcast %cst_31 : f32 to vector<8x1xf32>
    %51 = arith.divf %50, %49 : vector<8x1xf32>
    %c1 = arith.constant 1 : index
    %c0_32 = arith.constant 0 : index
    %c0_33 = arith.constant 0 : index
    %52 = vector.load %arg3[%c1, %c0_32, %c0_33] : memref<3x1x10xf32, #tpu.memory_space<vmem>>, vector<1x1x10xf32>
    %53 = vector.shape_cast %52 : vector<1x1x10xf32> to vector<1x10xf32>
    %54 = vector.broadcast %0 : vector<8x1xf32> to vector<8x10xf32>
    %55 = vector.broadcast %53 : vector<1x10xf32> to vector<8x10xf32>
    %56 = arith.mulf %54, %55 : vector<8x10xf32>
    %c1_34 = arith.constant 1 : index
    %c0_35 = arith.constant 0 : index
    %c0_36 = arith.constant 0 : index
    %57 = vector.load %arg4[%c1_34, %c0_35, %c0_36] : memref<3x1x10xf32, #tpu.memory_space<vmem>>, vector<1x1x10xf32>
    %58 = vector.shape_cast %57 : vector<1x1x10xf32> to vector<1x10xf32>
    %59 = vector.broadcast %58 : vector<1x10xf32> to vector<8x10xf32>
    %60 = arith.addf %56, %59 : vector<8x10xf32>
    %cst_37 = arith.constant 0.000000e+00 : f32
    %61 = vector.broadcast %cst_37 : f32 to vector<8x10xf32>
    %62 = arith.subf %61, %60 : vector<8x10xf32>
    %63 = math.exp %62 : vector<8x10xf32>
    %cst_38 = arith.constant 1.000000e+00 : f32
    %64 = vector.broadcast %cst_38 : f32 to vector<8x10xf32>
    %65 = arith.addf %64, %63 : vector<8x10xf32>
    %cst_39 = arith.constant 1.000000e+00 : f32
    %66 = vector.broadcast %cst_39 : f32 to vector<8x10xf32>
    %67 = arith.divf %66, %65 : vector<8x10xf32>
    %c1_40 = arith.constant 1 : index
    %c0_41 = arith.constant 0 : index
    %c0_42 = arith.constant 0 : index
    %68 = vector.load %arg5[%c1_40, %c0_41, %c0_42] : memref<3x10x10xf32, #tpu.memory_space<vmem>>, vector<1x10x10xf32>
    %69 = vector.shape_cast %68 : vector<1x10x10xf32> to vector<10x10xf32>
    %cst_43 = arith.constant dense<0.000000e+00> : vector<8x10xf32>
    %70 = tpu.matmul %67, %69, %cst_43 {dimension_numbers = #tpu.dot_dimension_numbers<[1], [0], [0], [1], [0, 0, 1, 1], [], []>} : vector<8x10xf32>, vector<10x10xf32>, vector<8x10xf32> -> vector<8x10xf32>
    %c1_44 = arith.constant 1 : index
    %c0_45 = arith.constant 0 : index
    %c0_46 = arith.constant 0 : index
    %71 = vector.load %arg6[%c1_44, %c0_45, %c0_46] : memref<3x1x10xf32, #tpu.memory_space<vmem>>, vector<1x1x10xf32>
    %72 = vector.shape_cast %71 : vector<1x1x10xf32> to vector<1x10xf32>
    %73 = vector.broadcast %72 : vector<1x10xf32> to vector<8x10xf32>
    %74 = arith.addf %70, %73 : vector<8x10xf32>
    %cst_47 = arith.constant 0.000000e+00 : f32
    %75 = vector.broadcast %cst_47 : f32 to vector<8x10xf32>
    %76 = arith.subf %75, %74 : vector<8x10xf32>
    %77 = math.exp %76 : vector<8x10xf32>
    %cst_48 = arith.constant 1.000000e+00 : f32
    %78 = vector.broadcast %cst_48 : f32 to vector<8x10xf32>
    %79 = arith.addf %78, %77 : vector<8x10xf32>
    %cst_49 = arith.constant 1.000000e+00 : f32
    %80 = vector.broadcast %cst_49 : f32 to vector<8x10xf32>
    %81 = arith.divf %80, %79 : vector<8x10xf32>
    %c1_50 = arith.constant 1 : index
    %c0_51 = arith.constant 0 : index
    %c0_52 = arith.constant 0 : index
    %82 = vector.load %arg7[%c1_50, %c0_51, %c0_52] : memref<3x1x10xf32, #tpu.memory_space<vmem>>, vector<1x1x10xf32>
    %83 = vector.shape_cast %82 : vector<1x1x10xf32> to vector<1x10xf32>
    %84 = vector.broadcast %83 : vector<1x10xf32> to vector<8x10xf32>
    %85 = arith.mulf %81, %84 : vector<8x10xf32>
    %cst_53 = arith.constant dense<0.000000e+00> : vector<8xf32>
    %86 = vector.multi_reduction <add>, %85, %cst_53 [1] : vector<8x10xf32> to vector<8xf32>
    %87 = vector.shape_cast %86 : vector<8xf32> to vector<8x1xf32>
    %c1_54 = arith.constant 1 : index
    %c0_55 = arith.constant 0 : index
    %c0_56 = arith.constant 0 : index
    %88 = vector.load %arg8[%c1_54, %c0_55, %c0_56] : memref<3x1x1xf32, #tpu.memory_space<vmem>>, vector<1x1x1xf32>
    %89 = vector.shape_cast %88 : vector<1x1x1xf32> to vector<1x1xf32>
    %90 = vector.broadcast %89 : vector<1x1xf32> to vector<8x1xf32>
    %91 = arith.addf %87, %90 : vector<8x1xf32>
    %cst_57 = arith.constant 0.000000e+00 : f32
    %92 = vector.broadcast %cst_57 : f32 to vector<8x1xf32>
    %93 = arith.maximumf %91, %92 : vector<8x1xf32>
    %94 = math.absf %91 : vector<8x1xf32>
    %cst_58 = arith.constant 0.000000e+00 : f32
    %95 = vector.broadcast %cst_58 : f32 to vector<8x1xf32>
    %96 = arith.subf %95, %94 : vector<8x1xf32>
    %97 = math.exp %96 : vector<8x1xf32>
    %cst_59 = arith.constant 1.000000e+00 : f32
    %98 = vector.broadcast %cst_59 : f32 to vector<8x1xf32>
    %99 = arith.addf %98, %97 : vector<8x1xf32>
    %100 = math.log %99 : vector<8x1xf32>
    %101 = arith.addf %93, %100 : vector<8x1xf32>
    %c2 = arith.constant 2 : index
    %c0_60 = arith.constant 0 : index
    %c0_61 = arith.constant 0 : index
    %102 = vector.load %arg3[%c2, %c0_60, %c0_61] : memref<3x1x10xf32, #tpu.memory_space<vmem>>, vector<1x1x10xf32>
    %103 = vector.shape_cast %102 : vector<1x1x10xf32> to vector<1x10xf32>
    %104 = vector.broadcast %0 : vector<8x1xf32> to vector<8x10xf32>
    %105 = vector.broadcast %103 : vector<1x10xf32> to vector<8x10xf32>
    %106 = arith.mulf %104, %105 : vector<8x10xf32>
    %c2_62 = arith.constant 2 : index
    %c0_63 = arith.constant 0 : index
    %c0_64 = arith.constant 0 : index
    %107 = vector.load %arg4[%c2_62, %c0_63, %c0_64] : memref<3x1x10xf32, #tpu.memory_space<vmem>>, vector<1x1x10xf32>
    %108 = vector.shape_cast %107 : vector<1x1x10xf32> to vector<1x10xf32>
    %109 = vector.broadcast %108 : vector<1x10xf32> to vector<8x10xf32>
    %110 = arith.addf %106, %109 : vector<8x10xf32>
    %cst_65 = arith.constant 0.000000e+00 : f32
    %111 = vector.broadcast %cst_65 : f32 to vector<8x10xf32>
    %112 = arith.subf %111, %110 : vector<8x10xf32>
    %113 = math.exp %112 : vector<8x10xf32>
    %cst_66 = arith.constant 1.000000e+00 : f32
    %114 = vector.broadcast %cst_66 : f32 to vector<8x10xf32>
    %115 = arith.addf %114, %113 : vector<8x10xf32>
    %cst_67 = arith.constant 1.000000e+00 : f32
    %116 = vector.broadcast %cst_67 : f32 to vector<8x10xf32>
    %117 = arith.divf %116, %115 : vector<8x10xf32>
    %c2_68 = arith.constant 2 : index
    %c0_69 = arith.constant 0 : index
    %c0_70 = arith.constant 0 : index
    %118 = vector.load %arg5[%c2_68, %c0_69, %c0_70] : memref<3x10x10xf32, #tpu.memory_space<vmem>>, vector<1x10x10xf32>
    %119 = vector.shape_cast %118 : vector<1x10x10xf32> to vector<10x10xf32>
    %cst_71 = arith.constant dense<0.000000e+00> : vector<8x10xf32>
    %120 = tpu.matmul %117, %119, %cst_71 {dimension_numbers = #tpu.dot_dimension_numbers<[1], [0], [0], [1], [0, 0, 1, 1], [], []>} : vector<8x10xf32>, vector<10x10xf32>, vector<8x10xf32> -> vector<8x10xf32>
    %c2_72 = arith.constant 2 : index
    %c0_73 = arith.constant 0 : index
    %c0_74 = arith.constant 0 : index
    %121 = vector.load %arg6[%c2_72, %c0_73, %c0_74] : memref<3x1x10xf32, #tpu.memory_space<vmem>>, vector<1x1x10xf32>
    %122 = vector.shape_cast %121 : vector<1x1x10xf32> to vector<1x10xf32>
    %123 = vector.broadcast %122 : vector<1x10xf32> to vector<8x10xf32>
    %124 = arith.addf %120, %123 : vector<8x10xf32>
    %cst_75 = arith.constant 0.000000e+00 : f32
    %125 = vector.broadcast %cst_75 : f32 to vector<8x10xf32>
    %126 = arith.subf %125, %124 : vector<8x10xf32>
    %127 = math.exp %126 : vector<8x10xf32>
    %cst_76 = arith.constant 1.000000e+00 : f32
    %128 = vector.broadcast %cst_76 : f32 to vector<8x10xf32>
    %129 = arith.addf %128, %127 : vector<8x10xf32>
    %cst_77 = arith.constant 1.000000e+00 : f32
    %130 = vector.broadcast %cst_77 : f32 to vector<8x10xf32>
    %131 = arith.divf %130, %129 : vector<8x10xf32>
    %c2_78 = arith.constant 2 : index
    %c0_79 = arith.constant 0 : index
    %c0_80 = arith.constant 0 : index
    %132 = vector.load %arg7[%c2_78, %c0_79, %c0_80] : memref<3x1x10xf32, #tpu.memory_space<vmem>>, vector<1x1x10xf32>
    %133 = vector.shape_cast %132 : vector<1x1x10xf32> to vector<1x10xf32>
    %134 = vector.broadcast %133 : vector<1x10xf32> to vector<8x10xf32>
    %135 = arith.mulf %131, %134 : vector<8x10xf32>
    %cst_81 = arith.constant dense<0.000000e+00> : vector<8xf32>
    %136 = vector.multi_reduction <add>, %135, %cst_81 [1] : vector<8x10xf32> to vector<8xf32>
    %137 = vector.shape_cast %136 : vector<8xf32> to vector<8x1xf32>
    %c2_82 = arith.constant 2 : index
    %c0_83 = arith.constant 0 : index
    %c0_84 = arith.constant 0 : index
    %138 = vector.load %arg8[%c2_82, %c0_83, %c0_84] : memref<3x1x1xf32, #tpu.memory_space<vmem>>, vector<1x1x1xf32>
    %139 = vector.shape_cast %138 : vector<1x1x1xf32> to vector<1x1xf32>
    %140 = vector.broadcast %139 : vector<1x1xf32> to vector<8x1xf32>
    %141 = arith.addf %137, %140 : vector<8x1xf32>
    %c0_85 = arith.constant 0 : index
    %c0_86 = arith.constant 0 : index
    %142 = vector.load %arg9[%c0_85, %c0_86] : memref<8x4xf32, #tpu.memory_space<vmem>>, vector<8x1xf32>
    tpu.vector_store %arg9[%c0_85, %c0_86], %4 {strides = array<i32>} : memref<8x4xf32, #tpu.memory_space<vmem>>, vector<8x1xf32>,
    %c0_87 = arith.constant 0 : index
    %c1_88 = arith.constant 1 : index
    %143 = vector.load %arg9[%c0_87, %c1_88] : memref<8x4xf32, #tpu.memory_space<vmem>>, vector<8x1xf32>
    tpu.vector_store %arg9[%c0_87, %c1_88], %51 {strides = array<i32>} : memref<8x4xf32, #tpu.memory_space<vmem>>, vector<8x1xf32>,
    %c0_89 = arith.constant 0 : index
    %c2_90 = arith.constant 2 : index
    %144 = vector.load %arg9[%c0_89, %c2_90] : memref<8x4xf32, #tpu.memory_space<vmem>>, vector<8x1xf32>
    tpu.vector_store %arg9[%c0_89, %c2_90], %101 {strides = array<i32>} : memref<8x4xf32, #tpu.memory_space<vmem>>, vector<8x1xf32>,
    %c0_91 = arith.constant 0 : index
    %c3 = arith.constant 3 : index
    %145 = vector.load %arg9[%c0_91, %c3] : memref<8x4xf32, #tpu.memory_space<vmem>>, vector<8x1xf32>
    tpu.vector_store %arg9[%c0_91, %c3], %141 {strides = array<i32>} : memref<8x4xf32, #tpu.memory_space<vmem>>, vector<8x1xf32>,
    return
  }
  func.func @transform_0(%arg0: i32) -> (i32, i32) {
    %c0_i32 = arith.constant 0 : i32
    %c0_i32_0 = arith.constant 0 : i32
    return %arg0, %c0_i32 : i32, i32
  }
  func.func @transform_1(%arg0: i32) -> (i32, i32) {
    %c0_i32 = arith.constant 0 : i32
    %c0_i32_0 = arith.constant 0 : i32
    return %arg0, %c0_i32 : i32, i32
  }
  func.func @transform_2(%arg0: i32) -> (i32, i32, i32) {
    %c0_i32 = arith.constant 0 : i32
    %c0_i32_0 = arith.constant 0 : i32
    %c0_i32_1 = arith.constant 0 : i32
    %c0_i32_2 = arith.constant 0 : i32
    return %c0_i32, %c0_i32_0, %c0_i32_1 : i32, i32, i32
  }
  func.func @transform_3(%arg0: i32) -> (i32, i32, i32) {
    %c0_i32 = arith.constant 0 : i32
    %c0_i32_0 = arith.constant 0 : i32
    %c0_i32_1 = arith.constant 0 : i32
    %c0_i32_2 = arith.constant 0 : i32
    return %c0_i32, %c0_i32_0, %c0_i32_1 : i32, i32, i32
  }
  func.func @transform_4(%arg0: i32) -> (i32, i32, i32) {
    %c0_i32 = arith.constant 0 : i32
    %c0_i32_0 = arith.constant 0 : i32
    %c0_i32_1 = arith.constant 0 : i32
    %c0_i32_2 = arith.constant 0 : i32
    return %c0_i32, %c0_i32_0, %c0_i32_1 : i32, i32, i32
  }
  func.func @transform_5(%arg0: i32) -> (i32, i32, i32) {
    %c0_i32 = arith.constant 0 : i32
    %c0_i32_0 = arith.constant 0 : i32
    %c0_i32_1 = arith.constant 0 : i32
    %c0_i32_2 = arith.constant 0 : i32
    return %c0_i32, %c0_i32_0, %c0_i32_1 : i32, i32, i32
  }
  func.func @transform_6(%arg0: i32) -> (i32, i32, i32) {
    %c0_i32 = arith.constant 0 : i32
    %c0_i32_0 = arith.constant 0 : i32
    %c0_i32_1 = arith.constant 0 : i32
    %c0_i32_2 = arith.constant 0 : i32
    return %c0_i32, %c0_i32_0, %c0_i32_1 : i32, i32, i32
  }
  func.func @transform_7(%arg0: i32) -> (i32, i32, i32) {
    %c0_i32 = arith.constant 0 : i32
    %c0_i32_0 = arith.constant 0 : i32
    %c0_i32_1 = arith.constant 0 : i32
    %c0_i32_2 = arith.constant 0 : i32
    return %c0_i32, %c0_i32_0, %c0_i32_1 : i32, i32, i32
  }
  func.func @transform_8(%arg0: i32) -> (i32, i32) {
    %c0_i32 = arith.constant 0 : i32
    %c0_i32_0 = arith.constant 0 : i32
    return %arg0, %c0_i32 : i32, i32
  }
}

</mosaic_0001>

<bundles_post_ra>
// kernel: tpu_custom_call.1
= control target key start
LH: loop header
LB: loop body
LE: loop exit
PB: predicated region body
PF: predicated region fallthrough
CT: control target
= control target key end

     0   :  { %s883_s27 = smov 0   ;;  %s985_s0 = inlined_call_operand.vmem [shape: f32[32,1], index: 0, kind: input, shape index: {}]   ;;  %s986_s1 = inlined_call_operand.vmem [shape: f32[32,1], index: 1, kind: input, shape index: {}]   ;;  %s987_s2 = inlined_call_operand.vmem [shape: f32[3,1,10], index: 2, kind: input, shape index: {}]   ;;  %s988_s3 = inlined_call_operand.vmem [shape: f32[3,1,10], index: 3, kind: input, shape index: {}]   ;;  %s989_s4 = inlined_call_operand.vmem [shape: f32[3,10,10], index: 4, kind: input, shape index: {}]   ;;  %s990_s5 = inlined_call_operand.vmem [shape: f32[3,1,10], index: 5, kind: input, shape index: {}]   ;;  %s991_s6 = inlined_call_operand.vmem [shape: f32[3,1,10], index: 6, kind: input, shape index: {}]   ;;  %s992_s7 = inlined_call_operand.vmem [shape: f32[3,1,1], index: 7, kind: input, shape index: {}]   ;;  %s993_s8 = inlined_call_operand.vmem [shape: f32[32,4], index: 8, kind: output, shape index: {}]  }
   0x1 LB: > { %s734_s28 = sadd.s32 4294967295, %s832_s27   ;;  %p738_p0 = scmp.ge.s32.totalorder %s832_s27, 1  ;;  %s832_s27 = sphi %s883_s27, %s18_s27  }
   0x2   : > { %p270_p1 = scmp.lt.s32.totalorder %s832_s27, 5 }
   0x4   : > { %p271_p2 = pnand %p738_p0, %p270_p1 }
   0x5   : > { %p306_p3 = scmp.lt.s32.totalorder (!%p271_p2), %s734_s28, 3  ;;  %s835_s19 = smov (!%p271_p2), 3  }
   0x6   : > { %274 = sbr.rel (%p271_p2) target bundleno = 574 (0x23e), region = 52  ;;  %s837_s20 = smov (!%p271_p2), 2  }
   0xb   : > { %v834_v0 = vmov 0   ;;  %s995_s28 = smov (!%p306_p3, %s734_s28), 3  ;;  %v358_v2 = vld [vmem:[%s989_s4 + $0x8] sm:$0x3]  ;;  %vm367_vm0 = vcmask 1041408   ;;  %v357_v4 = vld [vmem:[%s989_s4] sm:$0xff] }
   0xc   : > { %776 = vset.pattern.permute.xlu0 %v834_v0  ;;  %s891_s29 = sshll.u32 %s995_s28, 3  ;;  %v747_v3 = vld [vmem:[%s989_s4 + $0x18] sm:$0x3]  ;;  %742 = vmatpush.msk.msra.mxu0 %vm367_vm0, %v358_v2  ;;  %v756_v5 = vld [vmem:[%s989_s4 + $0x28] sm:$0x3]  ;;  %v746_v6 = vld [vmem:[%s989_s4 + $0x10] sm:$0xff] }
   0xd   : > { %s313_s10 = scalar_lea.vmem %s986_s1, %s891_s29  ;;  %749 = vmatpush.msk.msra.mxu1 %vm367_vm0, %v747_v3  ;;  %v755_v7 = vld [vmem:[%s989_s4 + $0x20] sm:$0xff]  ;;  %758 = vmatpush.msk.msra.mxu2 %vm367_vm0, %v756_v5  ;;  %vm363_vm1 = vcmask 80896   ;;  %s309_s9 = scalar_lea.vmem %s985_s0, %s891_s29 }
   0xe   : > { %v318_v1 = vld [vmem:[%s313_s10] sm:$0xff]  ;;  %386 = vmatpush.msra.mxu0 %v357_v4  ;;  %s976_s18 = scalar_lea.vmem %s993_s8, %s891_s29  ;;  %s836_s29 = smov 1  }
   0xf   : > { %326 = vperm.xlu0 %776, %v318_v1   ;;  %502 = vmatpush.msra.mxu1 %v746_v6  ;;  %v777_v8 = vld [vmem:[%s987_s2] ss:$0 sm:$0xff]  ;;  %v779_v9 = vld [vmem:[%s987_s2 + $0x1] ss:$0 sm:$0xff]  ;;  %v781_v10 = vld [vmem:[%s987_s2 + $0x2] ss:$0 sm:$0xff] }
  0x10   : > { %610 = vmatpush.msra.mxu2 %v755_v7  ;;  %v778_v11 = vld [vmem:[%s988_s3] ss:$0 sm:$0xff]  ;;  %v780_v12 = vld [vmem:[%s988_s3 + $0x1] ss:$0 sm:$0xff]  ;;  %v782_v13 = vld [vmem:[%s988_s3 + $0x2] ss:$0 sm:$0xff] }
  0x11   : > { %v783_v63 = vld [vmem:[%s990_s5] ss:$0 sm:$0xff]  ;;  %v784_v0 = vld [vmem:[%s990_s5 + $0x1] ss:$0 sm:$0xff] }
  0x81   : > { %v327_v14 = vpop.permute.xlu0 %326 }
  0x82   : > { %v332_v15 = vmul.f32 %v777_v8, %v327_v14  ;;  %v447_v16 = vmul.f32 %v779_v9, %v327_v14  ;;  %v555_v17 = vmul.f32 %v781_v10, %v327_v14  ;;  %v785_v8 = vld [vmem:[%s990_s5 + $0x2] ss:$0 sm:$0xff] }
  0x84   : > { %v337_v18 = vadd.f32 %v778_v11, %v332_v15  ;;  %v453_v19 = vadd.f32 %v780_v12, %v447_v16  ;;  %v561_v20 = vadd.f32 %v782_v13, %v555_v17 }
  0x86   : > { %v338_v21 = vsub.f32 0.0, %v337_v18  ;;  %v454_v22 = vsub.f32 0.0, %v453_v19  ;;  %v562_v23 = vsub.f32 0.0, %v561_v20 }
  0x88   : > { %v339_v24 = vmul.f32 1.442695, %v338_v21  ;;  %v455_v25 = vmul.f32 1.442695, %v454_v22  ;;  %v563_v26 = vmul.f32 1.442695, %v562_v23 }
  0x8a   : > { %792 = vpow2.f32 %v339_v24 }
  0x8b   : > { %794 = vpow2.f32 %v455_v25 }
  0x8c   : > { %796 = vpow2.f32 %v563_v26 }
  0x90   : > { %v793_v27 = vpop.eup %792 }
  0x91   : > { %v795_v28 = vpop.eup %794  ;;  %v341_v29 = vadd.f32 1.0, %v793_v27 }
  0x92   : > { %v797_v30 = vpop.eup %796  ;;  %v457_v31 = vadd.f32 1.0, %v795_v28 }
  0x93   : > { %798 = vrcp.f32 %v341_v29  ;;  %v565_v32 = vadd.f32 1.0, %v797_v30  ;;  %vm347_vm2 = vweird.f32 %v341_v29  ;;  %v351_v40 = vand.u32 2147483647, %v341_v29 }
  0x94   : > { %800 = vrcp.f32 %v457_v31  ;;  %v353_v41 = vand.u32 2147483648, %v341_v29  ;;  %v469_v44 = vand.u32 2147483648, %v457_v31  ;;  %v467_v47 = vand.u32 2147483647, %v457_v31 }
  0x95   : > { %802 = vrcp.f32 %v565_v32  ;;  %v577_v48 = vand.u32 2147483648, %v565_v32  ;;  %v575_v51 = vand.u32 2147483647, %v565_v32  ;;  %vm352_vm7 = vcmp.eq.f32.partialorder %v351_v40, 8.507059e+37 }
  0x96   : > { %v354_v52 = vor.u32 1.1754944e-38, %v353_v41  ;;  %vm463_vm8 = vweird.f32 %v457_v31  ;;  %v470_v55 = vor.u32 1.1754944e-38, %v469_v44  ;;  %vm571_vm10 = vweird.f32 %v565_v32 }
  0x97   : > { %vm468_vm11 = vcmp.eq.f32.partialorder %v467_v47, 8.507059e+37  ;;  %v578_v59 = vor.u32 1.1754944e-38, %v577_v48  ;;  %vm576_vm13 = vcmp.eq.f32.partialorder %v575_v51, 8.507059e+37 }
  0x99   : > { %v799_v33 = vpop.eup %798 }
  0x9a   : > { %v801_v34 = vpop.eup %800  ;;  %v343_v35 = vmul.f32 %v799_v33, %v341_v29  ;;  %vm348_vm3 = vweird.f32 %v799_v33 }
  0x9b   : > { %v803_v36 = vpop.eup %802  ;;  %v459_v37 = vmul.f32 %v801_v34, %v457_v31  ;;  %vm464_vm4 = vweird.f32 %v801_v34  ;;  %vm349_vm6 = vmor %vm347_vm2, %vm348_vm3 }
  0x9c   : > { %v344_v38 = vsub.f32 1.0, %v343_v35  ;;  %v567_v39 = vmul.f32 %v803_v36, %v565_v32  ;;  %vm572_vm5 = vweird.f32 %v803_v36  ;;  %vm465_vm9 = vmor %vm463_vm8, %vm464_vm4 }
  0x9d   : > { %v460_v42 = vsub.f32 1.0, %v459_v37  ;;  %vm573_vm12 = vmor %vm571_vm10, %vm572_vm5 }
  0x9e   : > { %v345_v43 = vmul.f32 %v799_v33, %v344_v38  ;;  %v568_v45 = vsub.f32 1.0, %v567_v39 }
  0x9f   : > { %v461_v46 = vmul.f32 %v801_v34, %v460_v42 }
  0xa0   : > { %v346_v49 = vadd.f32 %v799_v33, %v345_v43  ;;  %v569_v50 = vmul.f32 %v803_v36, %v568_v45 }
  0xa1   : > { %v462_v53 = vadd.f32 %v801_v34, %v461_v46 }
  0xa2   : > { %v350_v54 = vsel %vm349_vm6, %v799_v33, %v346_v49  ;;  %v570_v56 = vadd.f32 %v803_v36, %v569_v50  ;;  %v787_v33 = vld [vmem:[%s991_s6] ss:$0 sm:$0xff] }
  0xa3   : > { %v355_v57 = vsel %vm352_vm7, %v354_v52, %v350_v54  ;;  %v466_v58 = vsel %vm465_vm9, %v801_v34, %v462_v53  ;;  %v788_v53 = vld [vmem:[%s991_s6 + $0x2] ss:$0 sm:$0xff] }
  0xa4   : > { %743 = vmatmul.msk.f32.vlgmr.msra.gmra.mxu0 %vm363_vm1, %v355_v57  ;;  %v471_v60 = vsel %vm468_vm11, %v470_v55, %v466_v58  ;;  %v574_v61 = vsel %vm573_vm12, %v803_v36, %v570_v56  ;;  %v786_v36 = vld [vmem:[%s991_s6 + $0x1] ss:$0 sm:$0xff] }
  0xa5   : > { %750 = vmatmul.msk.f32.vlgmr.msra.gmra.mxu1 %vm363_vm1, %v471_v60  ;;  %v579_v62 = vsel %vm576_vm13, %v578_v59, %v574_v61  ;;  %v319_v59 = vld [vmem:[%s309_s9] sm:$0xff] }
  0xa6   : > { %759 = vmatmul.msk.f32.vlgmr.msra.gmra.mxu2 %vm363_vm1, %v579_v62  ;;  %v790_v60 = vld [vmem:[%s992_s7] ss:$0 sm:$0xff]  ;;  %v789_v61 = vld [vmem:[%s992_s7 + $0x1] ss:$0 sm:$0xff] }
 0x121   : > { %v388_v1 = vpop.f32.mrf.mxu0 }
 0x122   : > { %v389_v2 = vadd.f32 %v783_v63, %v388_v1  ;;  %v504_v3 = vpop.f32.mrf.mxu1 }
 0x123   : > { %v505_v4 = vadd.f32 %v784_v0, %v504_v3 }
 0x124   : > { %v391_v5 = vsub.f32 0.0, %v389_v2 }
 0x125   : > { %v507_v6 = vsub.f32 0.0, %v505_v4 }
 0x126   : > { %v392_v7 = vmul.f32 1.442695, %v391_v5 }
 0x127   : > { %v508_v9 = vmul.f32 1.442695, %v507_v6 }
 0x128   : > { %804 = vpow2.f32 %v392_v7 }
 0x129   : > { %806 = vpow2.f32 %v508_v9  ;;  %v612_v10 = vpop.f32.mrf.mxu2  ;;  %v791_v9 = vld [vmem:[%s992_s7 + $0x2] ss:$0 sm:$0xff] }
 0x12a   : > { %v613_v11 = vadd.f32 %v785_v8, %v612_v10 }
 0x12c   : > { %v615_v12 = vsub.f32 0.0, %v613_v11 }
 0x12e   : > { %v805_v13 = vpop.eup %804  ;;  %v616_v14 = vmul.f32 1.442695, %v615_v12 }
 0x12f   : > { %v807_v15 = vpop.eup %806  ;;  %v394_v16 = vadd.f32 1.0, %v805_v13 }
 0x130   : > { %v510_v17 = vadd.f32 1.0, %v807_v15  ;;  %808 = vpow2.f32 %v616_v14 }
 0x131   : > { %810 = vrcp.f32 %v394_v16  ;;  %v406_v26 = vand.u32 2147483648, %v394_v16  ;;  %v404_v29 = vand.u32 2147483647, %v394_v16  ;;  %vm400_vm0 = vweird.f32 %v394_v16 }
 0x132   : > { %812 = vrcp.f32 %v510_v17  ;;  %v522_v27 = vand.u32 2147483648, %v510_v17  ;;  %v520_v31 = vand.u32 2147483647, %v510_v17  ;;  %vm516_vm2 = vweird.f32 %v510_v17 }
 0x133   : > { %v407_v37 = vor.u32 1.1754944e-38, %v406_v26  ;;  %vm405_vm5 = vcmp.eq.f32.partialorder %v404_v29, 8.507059e+37 }
 0x134   : > { %v523_v38 = vor.u32 1.1754944e-38, %v522_v27  ;;  %vm521_vm6 = vcmp.eq.f32.partialorder %v520_v31, 8.507059e+37 }
 0x136   : > { %v809_v18 = vpop.eup %808 }
 0x137   : > { %v811_v19 = vpop.eup %810  ;;  %v618_v20 = vadd.f32 1.0, %v809_v18 }
 0x138   : > { %v813_v21 = vpop.eup %812  ;;  %v396_v22 = vmul.f32 %v811_v19, %v394_v16  ;;  %vm401_vm14 = vweird.f32 %v811_v19 }
 0x139   : > { %814 = vrcp.f32 %v618_v20  ;;  %v512_v23 = vmul.f32 %v813_v21, %v510_v17  ;;  %vm517_vm15 = vweird.f32 %v813_v21  ;;  %vm402_vm3 = vmor %vm400_vm0, %vm401_vm14  ;;  %v630_v47 = vand.u32 2147483648, %v618_v20 }
 0x13a   : > { %v397_v24 = vsub.f32 1.0, %v396_v22  ;;  %vm518_vm4 = vmor %vm516_vm2, %vm517_vm15  ;;  %v628_v50 = vand.u32 2147483647, %v618_v20  ;;  %vm624_vm8 = vweird.f32 %v618_v20  ;;  %816 = vlog2.f32 %v319_v59 }
 0x13b   : > { %v513_v25 = vsub.f32 1.0, %v512_v23  ;;  %v631_v54 = vor.u32 1.1754944e-38, %v630_v47  ;;  %vm655_vm15 = vcmask 15368   ;;  %vm661_vm0 = vcmask 23568  }
 0x13c   : > { %v398_v28 = vmul.f32 %v811_v19, %v397_v24  ;;  %vm629_vm10 = vcmp.eq.f32.partialorder %v628_v50, 8.507059e+37  ;;  %vm667_vm2 = vcmask 31768  }
 0x13d   : > { %v514_v30 = vmul.f32 %v813_v21, %v513_v25 }
 0x13e   : > { %v399_v32 = vadd.f32 %v811_v19, %v398_v28 }
 0x13f   : > { %v815_v34 = vpop.eup %814  ;;  %v515_v35 = vadd.f32 %v813_v21, %v514_v30 }
 0x140   : > { %v403_v39 = vsel %vm402_vm3, %v811_v19, %v399_v32  ;;  %v620_v40 = vmul.f32 %v815_v34, %v618_v20  ;;  %vm625_vm7 = vweird.f32 %v815_v34  ;;  %v817_v62 = vpop.eup %816 }
 0x141   : > { %v519_v41 = vsel %vm518_vm4, %v813_v21, %v515_v35  ;;  %v408_v42 = vsel %vm405_vm5, %v407_v37, %v403_v39  ;;  %vm626_vm9 = vmor %vm624_vm8, %vm625_vm7  ;;  %v321_v2 = vmul.f32 0.6931472, %v817_v62 }
 0x142   : > { %v524_v43 = vsel %vm521_vm6, %v523_v38, %v519_v41  ;;  %v414_v44 = vmul.f32 %v787_v33, %v408_v42  ;;  %v621_v45 = vsub.f32 1.0, %v620_v40 }
 0x143   : > { %v531_v46 = vmul.f32 %v786_v36, %v524_v43  ;;  %v322_v7 = vmul.f32 0.4342945, %v321_v2 }
 0x144   : > { %v415_v48 = vsel %vm363_vm1, %v414_v44, 0.0  ;;  %v622_v49 = vmul.f32 %v815_v34, %v621_v45 }
 0x145   : > { %v532_v51 = vsel %vm363_vm1, %v531_v46, 0.0  ;;  %416 = vadd.xlane.f32.xlu0 %v415_v48 }
 0x146   : > { %533 = vadd.xlane.f32.xlu1 %v532_v51  ;;  %v623_v52 = vadd.f32 %v815_v34, %v622_v49 }
 0x148   : > { %v627_v55 = vsel %vm626_vm9, %v815_v34, %v623_v52 }
 0x149   : > { %v632_v56 = vsel %vm629_vm10, %v631_v54, %v627_v55 }
 0x14a   : > { %v639_v57 = vmul.f32 %v788_v53, %v632_v56 }
 0x14c   : > { %v640_v58 = vsel %vm363_vm1, %v639_v57, 0.0  ;;  %vm649_vm1 = vcmask 7168  }
 0x14d   : > { %650 = vst.msk [vmem:[%s976_s18] sm:$0xff] %vm649_vm1, %v322_v7 }
 0x14e   : > { %641 = vadd.xlane.f32.xlu1 %v640_v58 }
 0x1b8   : > { %v417_v63 = vpop.xlane.xlu0 %416 }
 0x1b9   : > { %v534_v0 = vpop.xlane.xlu1 %533  ;;  %v422_v1 = vadd.f32 %v790_v60, %v417_v63 }
 0x1ba   : > { %v540_v3 = vadd.f32 %v789_v61, %v534_v0 }
 0x1bb   : > { %v423_v4 = vsub.f32 0.0, %v422_v1 }
 0x1bc   : > { %v542_v5 = vand.u32 2147483647, %v540_v3  ;;  %v541_v29 = vmax.f32 %v540_v3, 0.0 }
 0x1bd   : > { %v424_v6 = vmul.f32 1.442695, %v423_v4 }
 0x1be   : > { %v543_v8 = vsub.f32 0.0, %v542_v5 }
 0x1bf   : > { %818 = vpow2.f32 %v424_v6 }
 0x1c0   : > { %v544_v10 = vmul.f32 1.442695, %v543_v8 }
 0x1c1   : > { %v642_v11 = vpop.xlane.xlu1 %641 }
 0x1c2   : > { %v648_v12 = vadd.f32 %v791_v9, %v642_v11  ;;  %820 = vpow2.f32 %v544_v10 }
 0x1c4   : > { %664 = vrot.lane.b32.xlu1 %v648_v12, %s835_s19 }
 0x1c5   : > { %v819_v13 = vpop.eup %818 }
 0x1c6   : > { %v426_v14 = vadd.f32 1.0, %v819_v13 }
 0x1c8   : > { %822 = vrcp.f32 %v426_v14  ;;  %v821_v15 = vpop.eup %820  ;;  %v438_v20 = vand.u32 2147483648, %v426_v14  ;;  %v436_v22 = vand.u32 2147483647, %v426_v14  ;;  %vm432_vm12 = vweird.f32 %v426_v14 }
 0x1c9   : > { %v546_v17 = vadd.f32 1.0, %v821_v15 }
 0x1ca   : > { %v439_v24 = vor.u32 1.1754944e-38, %v438_v20  ;;  %vm437_vm14 = vcmp.eq.f32.partialorder %v436_v22, 8.507059e+37 }
 0x1cb   : > { %824 = vlog2.f32 %v546_v17 }
 0x1ce   : > { %v823_v16 = vpop.eup %822 }
 0x1cf   : > { %v428_v18 = vmul.f32 %v823_v16, %v426_v14  ;;  %vm433_vm11 = vweird.f32 %v823_v16 }
 0x1d0   : > { %vm434_vm13 = vmor %vm432_vm12, %vm433_vm11 }
 0x1d1   : > { %v429_v19 = vsub.f32 1.0, %v428_v18  ;;  %v825_v26 = vpop.eup %824 }
 0x1d2   : > { %v548_v28 = vmul.f32 0.6931472, %v825_v26 }
 0x1d3   : > { %v430_v21 = vmul.f32 %v823_v16, %v429_v19 }
 0x1d4   : > { %v549_v30 = vadd.f32 %v548_v28, %v541_v29 }
 0x1d5   : > { %v431_v23 = vadd.f32 %v823_v16, %v430_v21 }
 0x1d7   : > { %v435_v25 = vsel %vm434_vm13, %v823_v16, %v431_v23 }
 0x1d8   : > { %v440_v27 = vsel %vm437_vm14, %v439_v24, %v435_v25 }
 0x1d9   : > { %652 = vrot.lane.b32.xlu2 %v440_v27, %s836_s29 }
 0x1e1   : > { %658 = vrot.lane.b32.xlu2 %v549_v30, %s837_s20 }
 0x233   : > { %v653_v31 = vpop.permute.xlu2 %652 }
 0x234   : > { %656 = vst.msk [vmem:[%s976_s18] sm:$0xff] %vm655_vm15, %v653_v31 }
 0x236   : > { %v665_v33 = vpop.permute.xlu1 %664 }
 0x23b   : > { %v659_v32 = vpop.permute.xlu2 %658 }
 0x23c   : > { %662 = vst.msk [vmem:[%s976_s18] sm:$0xff] %vm661_vm0, %v659_v32 }
 0x23d   : > { %668 = vst.msk [vmem:[%s976_s18] sm:$0xff] %vm667_vm2, %v665_v33 }
 0x23e PF: > { %s18_s27 = sadd.s32 1, %s832_s27  }
 0x23f   : > { %p15_p4 = scmp.ge.s32.totalorder %s18_s27, 6  }
 0x241   :  { %17 = sbr.rel (!%p15_p4) target bundleno = 1 (0x1), region = 97 }

</bundles_post_ra>
